<compile_context>
chip_gen: v7x
topology: tpu7x:2x2x1
jax: 0.10.0
libtpu: 0.0.40
codegen_flags: <defaults>
</compile_context>

<pallas_src>
import functools

import jax
import jax.numpy as jnp
from jax import lax
from jax.experimental import pallas as pl
from jax.experimental.pallas import tpu as pltpu

LANES = 128
SUB = 16                      # row rounding that satisfies both (8,128) f32 and (16,128) 16-bit packing
MAX_TILE_ROWS = 8192          # (8192,128): 4 MiB f32 + 2 MiB bf16 per block, ~12 MiB double-buffered
CHUNK_ROWS = 512              # in-kernel row chunk: keeps elementwise temporaries small
VMEM_LIMIT_BYTES = 32 * 1024 * 1024


def _num_tensorcores():
    """Best-effort TensorCores-per-chip (2 on megacore/v7x-style chips). Falls back to 2."""
    try:
        info = pltpu.get_tpu_info()
    except Exception:
        return 2
    for name in ("num_tensorcores", "tensorcores_per_chip", "num_cores",
                 "cores_per_chip", "core_count"):
        v = getattr(info, name, None)
        if isinstance(v, int) and not isinstance(v, bool) and v >= 1:
            return min(v, 2)
    return 2


NCORES = _num_tensorcores()


def _make_kernel(*, n, tile_rows, chunk_rows, spc, covered_blocks, gamma):
    """Builds the per-step kernel. All shape/size arguments are trace-time Python ints."""
    tile_elems = tile_rows * LANES
    n_full_blocks = n // tile_elems          # blocks entirely inside the first n elements
    n_full_rows = n // LANES                 # fully-valid 128-lane rows
    n_rem_lanes = n % LANES                  # valid lanes in the last (partial) row
    all_full = (n == covered_blocks * tile_elems)    # grid exactly covers the tensor
    gamma_is_int = float(gamma).is_integer()
    n_chunks = tile_rows // chunk_rows
    sub_groups = chunk_rows // 8

    def _chunk_partials(p, t):
        # p, t: (chunk_rows, LANES) f32. Binary-target assumption (matches the torch module's
        # `target == 1` usage): ce == -log(pt + 1e-6). Single log per element (EUP).
        pt = jnp.where(t == 1.0, p, 1.0 - p)
        ce = -jnp.log(pt + 1e-6)
        omp = 1.0 - pt
        if gamma_is_int:
            mod = lax.integer_pow(omp, int(gamma))
        else:
            mod = omp ** jnp.float32(gamma)
        focal_el = ce * mod

        def red(x):
            # (chunk_rows,128) -> (8,128) sublane-preserving partial sum: pure VALU vreg adds,
            # no cross-lane work; the final lane/sublane reduce happens outside the kernel.
            return x.reshape(sub_groups, 8, LANES).sum(axis=0)

        # [focal, pred, target, pred*target] partial planes. (Alpha-weight plane is recovered
        # algebraically from the target sum in the finalize.)
        return jnp.stack([red(focal_el), red(p), red(t), red(p * t)], axis=0)

    def _reduce_tile(pred_ref, target_ref, b, masked):
        def body(c, acc):
            row0 = pl.multiple_of(c * chunk_rows, chunk_rows)
            p = pred_ref[pl.ds(row0, chunk_rows), :].astype(jnp.float32)
            t = target_ref[pl.ds(row0, chunk_rows), :].astype(jnp.float32)
            if masked:
                # Tail / dead chunks: sanitize before the log so OOB garbage can't make NaN.
                r = lax.broadcasted_iota(jnp.int32, (chunk_rows, LANES), 0)
                l = lax.broadcasted_iota(jnp.int32, (chunk_rows, LANES), 1)
                grow = b * tile_rows + row0 + r
                valid = (grow < n_full_rows) | ((grow == n_full_rows) & (l < n_rem_lanes))
                p = jnp.where(valid, p, 0.0)
                t = jnp.where(valid, t, 0.0)
            return acc + _chunk_partials(p, t)

        acc0 = jnp.zeros((4, 8, LANES), jnp.float32)
        if n_chunks == 1:
            return body(jnp.int32(0), acc0)
        return lax.fori_loop(0, n_chunks, body, acc0, unroll=2)

    def kernel(pred_ref, target_ref, out_ref):
        j = pl.program_id(1)

        @pl.when(j == 0)
        def _():
            out_ref[...] = jnp.zeros_like(out_ref)

        if all_full:
            # Grid covers the tensor exactly: no masking anywhere.
            out_ref[...] += _reduce_tile(pred_ref, target_ref, 0, masked=False)[jnp.newaxis]
        else:
            b = pl.program_id(0) * spc + j   # linear block id (may point past the last block)

            @pl.when(b < n_full_blocks)
            def _():  # fast path: block entirely within the tensor
                out_ref[...] += _reduce_tile(pred_ref, target_ref, b, masked=False)[jnp.newaxis]

            @pl.when(b >= n_full_blocks)
            def _():  # tail / dead blocks: masked; padded positions contribute exactly zero
                out_ref[...] += _reduce_tile(pred_ref, target_ref, b, masked=True)[jnp.newaxis]

    return kernel


@functools.partial(jax.jit, static_argnames=("alpha", "gamma", "focal_weight",
                                             "dice_weight", "smooth"))
def combined_loss(pred, target, *, alpha=0.35, gamma=3.0,
                  focal_weight=0.8, dice_weight=0.2, smooth=1e-6):
    n = pred.size

    # Pred streams at its native 16-bit width when possible; anything else goes to f32.
    pdt = pred.dtype
    if pdt not in (jnp.dtype(jnp.float32), jnp.dtype(jnp.bfloat16), jnp.dtype(jnp.float16)):
        pdt = jnp.dtype(jnp.float32)

    # Lane-align and round rows to a multiple of 16 (covers both f32 and 16-bit sublane
    # packing). Typical NCHW tensors have n % 2048 == 0 -> no pad / no extra HBM copy.
    rows = pl.cdiv(pl.cdiv(n, LANES), SUB) * SUB
    padded = rows * LANES

    # Target is a 0/1 mask -> exactly representable in bf16. Stream it at 16 bits whenever that
    # does not cost an extra HBM pass: native 16-bit targets stream as-is; if a padded copy must
    # be materialized anyway, fold the downcast into that pass. An already-aligned f32 target is
    # streamed directly (a standalone f32->bf16 cast would add a full read+write of the mask).
    tdt = target.dtype
    if tdt in (jnp.dtype(jnp.bfloat16), jnp.dtype(jnp.float16)):
        pass
    elif padded != n:
        tdt = jnp.dtype(jnp.bfloat16)
    else:
        tdt = jnp.dtype(jnp.float32)

    pred_f = pred.reshape(-1).astype(pdt)
    target_f = target.reshape(-1).astype(tdt)
    if padded != n:
        pred_f = jnp.pad(pred_f, (0, padded - n))
        target_f = jnp.pad(target_f, (0, padded - n))

    # Tile / chunk selection (trace-time Python ints).
    tile_rows = min(MAX_TILE_ROWS, rows)
    if tile_rows > CHUNK_ROWS:
        tile_rows = (tile_rows // CHUNK_ROWS) * CHUNK_ROWS
        chunk_rows = CHUNK_ROWS
    else:
        chunk_rows = tile_rows

    total_steps = pl.cdiv(rows, tile_rows)
    spc = pl.cdiv(total_steps, NCORES)       # sequential reduction steps per core
    last_block = total_steps - 1

    pred2 = pred_f.reshape(rows, LANES)
    target2 = target_f.reshape(rows, LANES)

    kernel = _make_kernel(n=n, tile_rows=tile_rows, chunk_rows=chunk_rows, spc=spc,
                          covered_blocks=NCORES * spc, gamma=gamma)

    def in_map(c, j):
        # Clamp so a trailing dead block (when NCORES*spc > total_steps) re-reads the last
        # real block; its contribution is fully masked to zero inside the kernel.
        return (jnp.minimum(c * spc + j, last_block), 0)

    parts = pl.pallas_call(
        kernel,
        out_shape=jax.ShapeDtypeStruct((NCORES, 4, 8, LANES), jnp.float32),
        grid_spec=pltpu.PrefetchScalarGridSpec(
            num_scalar_prefetch=0,
            grid=(NCORES, spc),
            in_specs=[pl.BlockSpec((tile_rows, LANES), in_map),
                      pl.BlockSpec((tile_rows, LANES), in_map)],
            out_specs=pl.BlockSpec((1, 4, 8, LANES), lambda c, j: (c, 0, 0, 0)),
        ),
        compiler_params=pltpu.CompilerParams(
            dimension_semantics=("parallel", "arbitrary"),
            vmem_limit_bytes=VMEM_LIMIT_BYTES),
    )(pred2, target2)

    # O(1) finalize in plain JAX (fused under jit): lane/sublane/core reduce + loss combine.
    sums = jnp.sum(parts, axis=(0, 2, 3))                     # (4,)
    focal_sum, p_sum, t_sum, inter = sums[0], sums[1], sums[2], sums[3]

    n_f = jnp.float32(n)
    focal = focal_sum / n_f                                    # FocalLoss(...).mean()
    # mean(where(t==1, alpha, 1-alpha)) for a binary mask, recovered algebraically from t_sum.
    w_mean = jnp.float32(1.0 - alpha) + jnp.float32(2.0 * alpha - 1.0) * (t_sum / n_f)
    fw_mean = focal * w_mean                                   # mean of focal_weighted
    dice = (2.0 * inter + smooth) / (p_sum + t_sum + smooth)
    return focal_weight * fw_mean + dice_weight * (1.0 - dice)


def combined_loss_ref(pred, target, alpha=0.35, gamma=3.0,
                      focal_weight=0.8, dice_weight=0.2, smooth=1e-6):
    # Direct transcription of the PyTorch CombinedLoss forward.
    pred = pred.astype(jnp.float32)
    target = target.astype(jnp.float32)
    ce = -(target * jnp.log(pred + 1e-6) + (1 - target) * jnp.log(1 - pred + 1e-6))
    pt = jnp.where(target == 1, pred, 1 - pred)
    focal = jnp.mean(ce * (1 - pt) ** gamma)
    focal_weighted = jnp.where(target == 1, alpha * focal, (1 - alpha) * focal)
    inter = jnp.sum(pred * target)
    union = jnp.sum(pred) + jnp.sum(target)
    dice = (2.0 * inter + smooth) / (union + smooth)
    return focal_weight * jnp.mean(focal_weighted) + dice_weight * (1 - dice)


if __name__ == "__main__":
    key = jax.random.PRNGKey(0)
    k1, k2, k3, k4, k5, k6 = jax.random.split(key, 6)

    # NCHW probabilities + binary mask, matching the torch module's expected inputs.
    pred = jax.nn.sigmoid(jax.random.normal(k1, (2, 4, 16, 16), dtype=jnp.float32))
    target = (jax.random.uniform(k2, (2, 4, 16, 16)) > 0.5).astype(jnp.float32)
    loss = combined_loss(pred, target)
    jax.block_until_ready(loss)
    ref = combined_loss_ref(pred, target)
    assert jnp.allclose(loss, ref, rtol=1e-4, atol=1e-6), (loss, ref)

    # Non-lane-aligned shape: exercises padding, the bf16 target downcast, and tail masking.
    pred2 = jax.nn.sigmoid(jax.random.normal(k3, (1, 3, 37, 53), dtype=jnp.float32))
    target2 = (jax.random.uniform(k4, (1, 3, 37, 53)) > 0.5).astype(jnp.float32)
    loss2 = combined_loss(pred2, target2)
    ref2 = combined_loss_ref(pred2, target2)
    assert jnp.allclose(loss2, ref2, rtol=1e-4, atol=1e-6), (loss2, ref2)

    # Multi-block shape with a partial tail block: exercises the chunked fori_loop reduction,
    # the unmasked fast path, and the masked tail path together.
    pred3 = jax.nn.sigmoid(jax.random.normal(k5, (2, 4, 128, 160), dtype=jnp.float32))
    target3 = (jax.random.uniform(k6, (2, 4, 128, 160)) > 0.5).astype(jnp.float32)
    loss3 = combined_loss(pred3, target3)
    ref3 = combined_loss_ref(pred3, target3)
    assert jnp.allclose(loss3, ref3, rtol=1e-4, atol=1e-6), (loss3, ref3)

    # bf16 inputs stream at half the HBM bytes; the upcast to f32 happens inside the kernel.
    loss4 = combined_loss(pred.astype(jnp.bfloat16), target.astype(jnp.bfloat16))
    ref4 = combined_loss_ref(pred.astype(jnp.bfloat16), target.astype(jnp.bfloat16))
    assert jnp.allclose(loss4, ref4, rtol=1e-4, atol=1e-6), (loss4, ref4)

    jax.block_until_ready((loss, loss2, loss3, loss4))
    print("KERNEL_OK")
</pallas_src>

<mosaic_0001>
module attributes {stable_mosaic.version = 11 : i64} {
  func.func @kernel(%arg0: i32, %arg1: i32, %arg2: memref<16x128xf32, #tpu.memory_space<vmem>>, %arg3: memref<16x128xf32, #tpu.memory_space<vmem>>, %arg4: memref<1x4x8x128xf32, #tpu.memory_space<vmem>>) attributes {dimension_semantics = [#tpu.dimension_semantics<parallel>, #tpu.dimension_semantics<arbitrary>], iteration_bounds = array<i64: 2, 1>, scalar_prefetch = 0 : i64, scratch_operands = 0 : i64, tpu.core_type = #tpu.core_type<tc>, window_params = [{transform_indices = @transform_0, window_bounds = array<i64: 16, 128>}, {transform_indices = @transform_1, window_bounds = array<i64: 16, 128>}, {transform_indices = @transform_2, window_bounds = array<i64: 1, 4, 8, 128>}]} {
    %c0_i32 = arith.constant 0 : i32
    %0 = arith.cmpi eq, %arg1, %c0_i32 : i32
    %1 = arith.extui %0 : i1 to i32
    %c0_i32_0 = arith.constant 0 : i32
    %2 = arith.cmpi ne, %1, %c0_i32_0 : i32
    scf.if %2 {
      %cst = arith.constant 0.000000e+00 : f32
      %11 = vector.broadcast %cst : f32 to vector<1x4x8x128xf32>
      %c0 = arith.constant 0 : index
      %c0_5 = arith.constant 0 : index
      %c0_6 = arith.constant 0 : index
      %c0_7 = arith.constant 0 : index
      %12 = vector.load %arg4[%c0, %c0_5, %c0_6, %c0_7] : memref<1x4x8x128xf32, #tpu.memory_space<vmem>>, vector<1x4x8x128xf32>
      tpu.vector_store %arg4[%c0, %c0_5, %c0_6, %c0_7], %11 {strides = array<i32>} : memref<1x4x8x128xf32, #tpu.memory_space<vmem>>, vector<1x4x8x128xf32>,
    } else {
    }
    %c1_i32 = arith.constant 1 : i32
    %3 = arith.muli %arg0, %c1_i32 : i32
    %4 = arith.addi %3, %arg1 : i32
    %c1_i32_1 = arith.constant 1 : i32
    %5 = arith.cmpi slt, %4, %c1_i32_1 : i32
    %6 = arith.extui %5 : i1 to i32
    %c0_i32_2 = arith.constant 0 : i32
    %7 = arith.cmpi ne, %6, %c0_i32_2 : i32
    scf.if %7 {
      %c0 = arith.constant 0 : index
      %c0_5 = arith.constant 0 : index
      %c0_6 = arith.constant 0 : index
      %c0_7 = arith.constant 0 : index
      %11 = vector.load %arg4[%c0, %c0_5, %c0_6, %c0_7] : memref<1x4x8x128xf32, #tpu.memory_space<vmem>>, vector<1x4x8x128xf32>
      %cst = arith.constant 0.000000e+00 : f32
      %12 = vector.broadcast %cst : f32 to vector<4x8x128xf32>
      %c0_i32_8 = arith.constant 0 : i32
      %c16_i32 = arith.constant 16 : i32
      %13 = arith.muli %c0_i32_8, %c16_i32 : i32
      %14 = tpu.assume_multiple %13, 16 : i32
      %15 = arith.index_cast %14 : i32 to index
      %c0_9 = arith.constant 0 : index
      %16 = vector.load %arg2[%15, %c0_9] : memref<16x128xf32, #tpu.memory_space<vmem>>, vector<16x128xf32>
      %17 = arith.index_cast %14 : i32 to index
      %c0_10 = arith.constant 0 : index
      %18 = vector.load %arg3[%17, %c0_10] : memref<16x128xf32, #tpu.memory_space<vmem>>, vector<16x128xf32>
      %cst_11 = arith.constant 1.000000e+00 : f32
      %19 = vector.broadcast %cst_11 : f32 to vector<16x128xf32>
      %20 = arith.cmpf oeq, %18, %19 : vector<16x128xf32>
      %cst_12 = arith.constant 1.000000e+00 : f32
      %21 = vector.broadcast %cst_12 : f32 to vector<16x128xf32>
      %22 = arith.subf %21, %16 : vector<16x128xf32>
      %23 = arith.select %20, %16, %22 : vector<16x128xi1>, vector<16x128xf32>
      %cst_13 = arith.constant 9.99999997E-7 : f32
      %24 = vector.broadcast %cst_13 : f32 to vector<16x128xf32>
      %25 = arith.addf %23, %24 : vector<16x128xf32>
      %26 = math.log %25 : vector<16x128xf32>
      %cst_14 = arith.constant 0.000000e+00 : f32
      %27 = vector.broadcast %cst_14 : f32 to vector<16x128xf32>
      %28 = arith.subf %27, %26 : vector<16x128xf32>
      %cst_15 = arith.constant 1.000000e+00 : f32
      %29 = vector.broadcast %cst_15 : f32 to vector<16x128xf32>
      %30 = arith.subf %29, %23 : vector<16x128xf32>
      %31 = arith.mulf %30, %30 : vector<16x128xf32>
      %32 = arith.mulf %30, %31 : vector<16x128xf32>
      %33 = arith.mulf %28, %32 : vector<16x128xf32>
      %34 = vector.shape_cast %33 : vector<16x128xf32> to vector<2x8x128xf32>
      %cst_16 = arith.constant dense<0.000000e+00> : vector<8x128xf32>
      %35 = vector.multi_reduction <add>, %34, %cst_16 [0] : vector<2x8x128xf32> to vector<8x128xf32>
      %36 = vector.shape_cast %16 : vector<16x128xf32> to vector<2x8x128xf32>
      %cst_17 = arith.constant dense<0.000000e+00> : vector<8x128xf32>
      %37 = vector.multi_reduction <add>, %36, %cst_17 [0] : vector<2x8x128xf32> to vector<8x128xf32>
      %38 = vector.shape_cast %18 : vector<16x128xf32> to vector<2x8x128xf32>
      %cst_18 = arith.constant dense<0.000000e+00> : vector<8x128xf32>
      %39 = vector.multi_reduction <add>, %38, %cst_18 [0] : vector<2x8x128xf32> to vector<8x128xf32>
      %40 = arith.mulf %16, %18 : vector<16x128xf32>
      %41 = vector.shape_cast %40 : vector<16x128xf32> to vector<2x8x128xf32>
      %cst_19 = arith.constant dense<0.000000e+00> : vector<8x128xf32>
      %42 = vector.multi_reduction <add>, %41, %cst_19 [0] : vector<2x8x128xf32> to vector<8x128xf32>
      %43 = vector.shape_cast %35 : vector<8x128xf32> to vector<1x8x128xf32>
      %44 = vector.shape_cast %37 : vector<8x128xf32> to vector<1x8x128xf32>
      %45 = vector.shape_cast %39 : vector<8x128xf32> to vector<1x8x128xf32>
      %46 = vector.shape_cast %42 : vector<8x128xf32> to vector<1x8x128xf32>
      %47 = tpu.concatenate %43, %44, %45, %46 in 0 : vector<1x8x128xf32>, vector<1x8x128xf32>, vector<1x8x128xf32>, vector<1x8x128xf32> -> vector<4x8x128xf32>
      %48 = arith.addf %12, %47 : vector<4x8x128xf32>
      %49 = vector.shape_cast %48 : vector<4x8x128xf32> to vector<1x4x8x128xf32>
      %50 = arith.addf %11, %49 : vector<1x4x8x128xf32>
      %c0_20 = arith.constant 0 : index
      %c0_21 = arith.constant 0 : index
      %c0_22 = arith.constant 0 : index
      %c0_23 = arith.constant 0 : index
      %51 = vector.load %arg4[%c0_20, %c0_21, %c0_22, %c0_23] : memref<1x4x8x128xf32, #tpu.memory_space<vmem>>, vector<1x4x8x128xf32>
      tpu.vector_store %arg4[%c0_20, %c0_21, %c0_22, %c0_23], %50 {strides = array<i32>} : memref<1x4x8x128xf32, #tpu.memory_space<vmem>>, vector<1x4x8x128xf32>,
    } else {
    }
    %c1_i32_3 = arith.constant 1 : i32
    %8 = arith.cmpi sge, %4, %c1_i32_3 : i32
    %9 = arith.extui %8 : i1 to i32
    %c0_i32_4 = arith.constant 0 : i32
    %10 = arith.cmpi ne, %9, %c0_i32_4 : i32
    scf.if %10 {
      %c0 = arith.constant 0 : index
      %c0_5 = arith.constant 0 : index
      %c0_6 = arith.constant 0 : index
      %c0_7 = arith.constant 0 : index
      %11 = vector.load %arg4[%c0, %c0_5, %c0_6, %c0_7] : memref<1x4x8x128xf32, #tpu.memory_space<vmem>>, vector<1x4x8x128xf32>
      %cst = arith.constant 0.000000e+00 : f32
      %12 = vector.broadcast %cst : f32 to vector<4x8x128xf32>
      %c0_i32_8 = arith.constant 0 : i32
      %c16_i32 = arith.constant 16 : i32
      %13 = arith.muli %c0_i32_8, %c16_i32 : i32
      %14 = tpu.assume_multiple %13, 16 : i32
      %15 = arith.index_cast %14 : i32 to index
      %c0_9 = arith.constant 0 : index
      %16 = vector.load %arg2[%15, %c0_9] : memref<16x128xf32, #tpu.memory_space<vmem>>, vector<16x128xf32>
      %17 = arith.index_cast %14 : i32 to index
      %c0_10 = arith.constant 0 : index
      %18 = vector.load %arg3[%17, %c0_10] : memref<16x128xf32, #tpu.memory_space<vmem>>, vector<16x128xf32>
      %19 = tpu.iota {dimensions = array<i32: 0>} : vector<16x128xi32>
      %20 = tpu.iota {dimensions = array<i32: 1>} : vector<16x128xi32>
      %c16_i32_11 = arith.constant 16 : i32
      %21 = arith.muli %4, %c16_i32_11 : i32
      %22 = arith.addi %21, %14 : i32
      %23 = vector.broadcast %22 : i32 to vector<16x128xi32>
      %24 = arith.addi %23, %19 : vector<16x128xi32>
      %c16_i32_12 = arith.constant 16 : i32
      %25 = vector.broadcast %c16_i32_12 : i32 to vector<16x128xi32>
      %26 = arith.cmpi slt, %24, %25 : vector<16x128xi32>
      %c16_i32_13 = arith.constant 16 : i32
      %27 = vector.broadcast %c16_i32_13 : i32 to vector<16x128xi32>
      %28 = arith.cmpi eq, %24, %27 : vector<16x128xi32>
      %c0_i32_14 = arith.constant 0 : i32
      %29 = vector.broadcast %c0_i32_14 : i32 to vector<16x128xi32>
      %30 = arith.cmpi slt, %20, %29 : vector<16x128xi32>
      %31 = arith.andi %28, %30 : vector<16x128xi1>
      %32 = arith.ori %26, %31 : vector<16x128xi1>
      %cst_15 = arith.constant 0.000000e+00 : f32
      %33 = vector.broadcast %cst_15 : f32 to vector<16x128xf32>
      %34 = arith.select %32, %16, %33 : vector<16x128xi1>, vector<16x128xf32>
      %cst_16 = arith.constant 0.000000e+00 : f32
      %35 = vector.broadcast %cst_16 : f32 to vector<16x128xf32>
      %36 = arith.select %32, %18, %35 : vector<16x128xi1>, vector<16x128xf32>
      %cst_17 = arith.constant 1.000000e+00 : f32
      %37 = vector.broadcast %cst_17 : f32 to vector<16x128xf32>
      %38 = arith.cmpf oeq, %36, %37 : vector<16x128xf32>
      %cst_18 = arith.constant 1.000000e+00 : f32
      %39 = vector.broadcast %cst_18 : f32 to vector<16x128xf32>
      %40 = arith.subf %39, %34 : vector<16x128xf32>
      %41 = arith.select %38, %34, %40 : vector<16x128xi1>, vector<16x128xf32>
      %cst_19 = arith.constant 9.99999997E-7 : f32
      %42 = vector.broadcast %cst_19 : f32 to vector<16x128xf32>
      %43 = arith.addf %41, %42 : vector<16x128xf32>
      %44 = math.log %43 : vector<16x128xf32>
      %cst_20 = arith.constant 0.000000e+00 : f32
      %45 = vector.broadcast %cst_20 : f32 to vector<16x128xf32>
      %46 = arith.subf %45, %44 : vector<16x128xf32>
      %cst_21 = arith.constant 1.000000e+00 : f32
      %47 = vector.broadcast %cst_21 : f32 to vector<16x128xf32>
      %48 = arith.subf %47, %41 : vector<16x128xf32>
      %49 = arith.mulf %48, %48 : vector<16x128xf32>
      %50 = arith.mulf %48, %49 : vector<16x128xf32>
      %51 = arith.mulf %46, %50 : vector<16x128xf32>
      %52 = vector.shape_cast %51 : vector<16x128xf32> to vector<2x8x128xf32>
      %cst_22 = arith.constant dense<0.000000e+00> : vector<8x128xf32>
      %53 = vector.multi_reduction <add>, %52, %cst_22 [0] : vector<2x8x128xf32> to vector<8x128xf32>
      %54 = vector.shape_cast %34 : vector<16x128xf32> to vector<2x8x128xf32>
      %cst_23 = arith.constant dense<0.000000e+00> : vector<8x128xf32>
      %55 = vector.multi_reduction <add>, %54, %cst_23 [0] : vector<2x8x128xf32> to vector<8x128xf32>
      %56 = vector.shape_cast %36 : vector<16x128xf32> to vector<2x8x128xf32>
      %cst_24 = arith.constant dense<0.000000e+00> : vector<8x128xf32>
      %57 = vector.multi_reduction <add>, %56, %cst_24 [0] : vector<2x8x128xf32> to vector<8x128xf32>
      %58 = arith.mulf %34, %36 : vector<16x128xf32>
      %59 = vector.shape_cast %58 : vector<16x128xf32> to vector<2x8x128xf32>
      %cst_25 = arith.constant dense<0.000000e+00> : vector<8x128xf32>
      %60 = vector.multi_reduction <add>, %59, %cst_25 [0] : vector<2x8x128xf32> to vector<8x128xf32>
      %61 = vector.shape_cast %53 : vector<8x128xf32> to vector<1x8x128xf32>
      %62 = vector.shape_cast %55 : vector<8x128xf32> to vector<1x8x128xf32>
      %63 = vector.shape_cast %57 : vector<8x128xf32> to vector<1x8x128xf32>
      %64 = vector.shape_cast %60 : vector<8x128xf32> to vector<1x8x128xf32>
      %65 = tpu.concatenate %61, %62, %63, %64 in 0 : vector<1x8x128xf32>, vector<1x8x128xf32>, vector<1x8x128xf32>, vector<1x8x128xf32> -> vector<4x8x128xf32>
      %66 = arith.addf %12, %65 : vector<4x8x128xf32>
      %67 = vector.shape_cast %66 : vector<4x8x128xf32> to vector<1x4x8x128xf32>
      %68 = arith.addf %11, %67 : vector<1x4x8x128xf32>
      %c0_26 = arith.constant 0 : index
      %c0_27 = arith.constant 0 : index
      %c0_28 = arith.constant 0 : index
      %c0_29 = arith.constant 0 : index
      %69 = vector.load %arg4[%c0_26, %c0_27, %c0_28, %c0_29] : memref<1x4x8x128xf32, #tpu.memory_space<vmem>>, vector<1x4x8x128xf32>
      tpu.vector_store %arg4[%c0_26, %c0_27, %c0_28, %c0_29], %68 {strides = array<i32>} : memref<1x4x8x128xf32, #tpu.memory_space<vmem>>, vector<1x4x8x128xf32>,
    } else {
    }
    return
  }
  func.func @transform_0(%arg0: i32, %arg1: i32) -> (i32, i32) {
    %c1_i32 = arith.constant 1 : i32
    %0 = arith.muli %arg0, %c1_i32 : i32
    %1 = arith.addi %0, %arg1 : i32
    %c0_i32 = arith.constant 0 : i32
    %2 = arith.minsi %1, %c0_i32 : i32
    %c0_i32_0 = arith.constant 0 : i32
    %c0_i32_1 = arith.constant 0 : i32
    return %2, %c0_i32_0 : i32, i32
  }
  func.func @transform_1(%arg0: i32, %arg1: i32) -> (i32, i32) {
    %c1_i32 = arith.constant 1 : i32
    %0 = arith.muli %arg0, %c1_i32 : i32
    %1 = arith.addi %0, %arg1 : i32
    %c0_i32 = arith.constant 0 : i32
    %2 = arith.minsi %1, %c0_i32 : i32
    %c0_i32_0 = arith.constant 0 : i32
    %c0_i32_1 = arith.constant 0 : i32
    return %2, %c0_i32_0 : i32, i32
  }
  func.func @transform_2(%arg0: i32, %arg1: i32) -> (i32, i32, i32, i32) {
    %c0_i32 = arith.constant 0 : i32
    %c0_i32_0 = arith.constant 0 : i32
    %c0_i32_1 = arith.constant 0 : i32
    %c0_i32_2 = arith.constant 0 : i32
    return %arg0, %c0_i32, %c0_i32_0, %c0_i32_1 : i32, i32, i32, i32
  }
}

</mosaic_0001>

<bundles_post_ra>
// kernel: combined_loss.1
= control target key start
LH: loop header
LB: loop body
LE: loop exit
PB: predicated region body
PF: predicated region fallthrough
CT: control target
= control target key end

     0   :  { %s523_s9 = smov 0   ;;  %s525_s10 = smov 0   ;;  %s605_s0 = inlined_call_operand.vmem [shape: f32[16,128], index: 0, kind: input, shape index: {}]   ;;  %s606_s1 = inlined_call_operand.vmem [shape: f32[16,128], index: 1, kind: input, shape index: {}]   ;;  %s607_s2 = inlined_call_operand.vmem [shape: f32[2,4,8,128], index: 2, kind: output, shape index: {}]  }
   0x1   :  { %s527_s11 = smov 0  }
   0x2 LB: > { %s24_s12 = sadd.s32 1, %s501_s10  ;;  %p437_p0 = scmp.ge.s32.totalorder %s505_s11, 1  ;;  %s505_s11 = sphi %s527_s11, %s12_s11   ;;  %s501_s10 = sphi %s525_s10, %s609_s10   ;;  %s497_s9 = sphi %s523_s9, %s608_s9  }
   0x3   : > { %p26_p1 = scmp.ge.s32.totalorder %s24_s12, 2  ;;  %p160_p2 = scmp.lt.s32.totalorder %s505_s11, 3 }
   0x5   : > { %s611_s12 = smov (%p26_p1, %s24_s12), 0  ;;  %p161_p3 = pnand %p437_p0, %p160_p2 }
   0x6   : > { %p194_p4 = scmp.lt.s32.totalorder (!%p161_p3), %s497_s9, 0  ;;  %p217_p5 = scmp.lt.s32.totalorder (!%p161_p3), %s497_s9, 1  ;;  %v507_v0 = vmov (!%p161_p3), 0.0  }
   0x7   : > { %164 = sbr.rel (%p161_p3) target bundleno = 88 (0x58), region = 28  ;;  %p444_p7 = scmp.ge.s32.totalorder (!%p161_p3), %s497_s9, 1 }
   0xe   : > { %s195_s13 = scalar_select %p194_p4, %s497_s9, 0 }
   0xf   : > { %s218_s14 = scalar_select %p217_p5, %s497_s9, 1 }
  0x10   : > { %s438_s15 = sshll.u32 %s195_s13, 1  ;;  %234 = sbr.rel (%p444_p7) target bundleno = 51 (0x33), region = 36 }
  0x11   : > { %p197_p6 = scmp.lt.s32.totalorder %s438_s15, 1  ;;  %s449_s16 = sshll.u32 %s218_s14, 5 }
  0x12   : > { %s552_s19 = scalar_lea.vmem %s607_s2, %s449_s16 }
  0x13   : > { %s613_s15 = smov (!%p197_p6, %s438_s15), 1  ;;  %226 = vst [vmem:[%s552_s19] sm:$0xff] %v507_v0  ;;  %227 = vst [vmem:[%s552_s19 + $0x8] sm:$0xff] %v507_v0 }
  0x14   : > { %228 = vst [vmem:[%s552_s19 + $0x10] sm:$0xff] %v507_v0  ;;  %229 = vst [vmem:[%s552_s19 + $0x18] sm:$0xff] %v507_v0  ;;  %s439_s20 = sshll.u32 %s613_s15, 3 }
  0x15   : > { %s561_s23 = scalar_lea.vmem %s605_s0, %s439_s20  ;;  %s566_s26 = scalar_lea.vmem %s606_s1, %s439_s20 }
  0x16   : > { %v239_v1 = vld [vmem:[%s561_s23] sm:$0xff] (!%p444_p7)  ;;  %v240_v2 = vld [vmem:[%s561_s23 + $0x8] sm:$0xff] (!%p444_p7) }
  0x17   : > { %v241_v3 = vld [vmem:[%s566_s26] sm:$0xff]  ;;  %v242_v4 = vld [vmem:[%s566_s26 + $0x8] sm:$0xff]  ;;  %v245_v5 = vsub.f32 1.0, %v239_v1  ;;  %v246_v6 = vsub.f32 1.0, %v240_v2  ;;  %v266_v8 = vadd.f32 %v240_v2, %v239_v1 }
  0x18   : > { %vm243_vm0 = vcmp.eq.f32.partialorder %v241_v3, 1.0  ;;  %vm244_vm1 = vcmp.eq.f32.partialorder %v242_v4, 1.0  ;;  %v267_v10 = vadd.f32 %v242_v4, %v241_v3  ;;  %v268_v11 = vmul.f32 %v241_v3, %v239_v1 }
  0x19   : > { %v247_v12 = vsel %vm243_vm0, %v239_v1, %v245_v5  ;;  %v248_v13 = vsel %vm244_vm1, %v240_v2, %v246_v6  ;;  %v269_v15 = vmul.f32 %v242_v4, %v240_v2 }
  0x1a   : > { %v236_v7 = vld [vmem:[%s552_s19 + $0x8] sm:$0xff]  ;;  %v249_v16 = vadd.f32 1e-06, %v247_v12  ;;  %v250_v17 = vadd.f32 1e-06, %v248_v13  ;;  %v257_v22 = vsub.f32 1.0, %v247_v12 }
  0x1b   : > { %v237_v9 = vld [vmem:[%s552_s19 + $0x10] sm:$0xff]  ;;  %v276_v14 = vadd.f32 %v266_v8, %v236_v7  ;;  %v238_v18 = vld [vmem:[%s552_s19 + $0x18] sm:$0xff]  ;;  %v270_v20 = vadd.f32 %v269_v15, %v268_v11  ;;  %v258_v23 = vsub.f32 1.0, %v248_v13  ;;  %v235_v36 = vld [vmem:[%s552_s19] sm:$0xff] }
  0x1c   : > { %v277_v19 = vadd.f32 %v267_v10, %v237_v9  ;;  %475 = vlog2.f32 %v249_v16  ;;  %v259_v24 = vmul.f32 %v257_v22, %v257_v22 }
  0x1d   : > { %280 = vst [vmem:[%s552_s19 + $0x8] sm:$0xff] %v276_v14  ;;  %477 = vlog2.f32 %v250_v17  ;;  %v278_v21 = vadd.f32 %v270_v20, %v238_v18  ;;  %v260_v25 = vmul.f32 %v258_v23, %v258_v23 }
  0x1e   : > { %281 = vst [vmem:[%s552_s19 + $0x10] sm:$0xff] %v277_v19  ;;  %v261_v29 = vmul.f32 %v259_v24, %v257_v22 }
  0x1f   : > { %282 = vst [vmem:[%s552_s19 + $0x18] sm:$0xff] %v278_v21  ;;  %v262_v31 = vmul.f32 %v260_v25, %v258_v23 }
  0x26   : > { %v476_v26 = vpop.eup %475 }
  0x27   : > { %v478_v27 = vpop.eup %477  ;;  %v252_v28 = vmul.f32 0.6931472, %v476_v26 }
  0x28   : > { %v254_v30 = vmul.f32 0.6931472, %v478_v27 }
  0x29   : > { %v255_v32 = vsub.f32 0.0, %v252_v28 }
  0x2a   : > { %v256_v33 = vsub.f32 0.0, %v254_v30 }
  0x2b   : > { %v263_v34 = vmul.f32 %v261_v29, %v255_v32 }
  0x2c   : > { %v264_v35 = vmul.f32 %v262_v31, %v256_v33 }
  0x2e   : > { %v265_v37 = vadd.f32 %v264_v35, %v263_v34 }
  0x30   : > { %v275_v38 = vadd.f32 %v265_v37, %v235_v36 }
  0x32   : > { %279 = vst [vmem:[%s552_s19] sm:$0xff] %v275_v38 }
  0x33 PF: > { %286 = sbr.rel (%p217_p5) target bundleno = 88 (0x58), region = 40  ;;  %v295_v39 = vlaneseq (!%p217_p5)  ;;  %s446_s27 = sshll.u32 (!%p217_p5), %s497_s9, 4  ;;  %v291_v42 = vld [vmem:[%s561_s23] sm:$0xff] (!%p217_p5)  ;;  %v292_v46 = vld [vmem:[%s561_s23 + $0x8] sm:$0xff] (!%p217_p5) }
  0x34   : > { %v302_v40 = vstv (!%p217_p5), %s446_s27  ;;  %v293_v43 = vld [vmem:[%s566_s26] sm:$0xff] (!%p217_p5)  ;;  %v294_v47 = vld [vmem:[%s566_s26 + $0x8] sm:$0xff] (!%p217_p5) }
  0x35   : > { %v296_v41 = vshrl.u32 (!%p217_p5), %v295_v39, 7 }
  0x36   : > { %v288_v54 = vld [vmem:[%s552_s19 + $0x8] sm:$0xff] (!%p217_p5) }
  0x37   : > { %v297_v44 = vadd.s32 (!%p217_p5), 8, %v296_v41  ;;  %v303_v45 = vadd.s32 (!%p217_p5), %v302_v40, %v296_v41  ;;  %v289_v60 = vld [vmem:[%s552_s19 + $0x10] sm:$0xff] (!%p217_p5)  ;;  %v290_v2 = vld [vmem:[%s552_s19 + $0x18] sm:$0xff] (!%p217_p5) }
  0x39   : > { %v304_v48 = vadd.s32 (!%p217_p5), %v302_v40, %v297_v44  ;;  %vm305_vm2 = vcmp.lt.s32.totalorder (!%p217_p5), %v303_v45, 16  ;;  %v287_v20 = vld [vmem:[%s552_s19] sm:$0xff] (!%p217_p5) }
  0x3a   : > { %v314_v49 = vsel %vm305_vm2, %v291_v42, 0.0  ;;  %v316_v50 = vsel %vm305_vm2, %v293_v43, 0.0 }
  0x3b   : > { %vm306_vm3 = vcmp.lt.s32.totalorder %v304_v48, 16  ;;  %vm318_vm4 = vcmp.eq.f32.partialorder %v316_v50, 1.0  ;;  %v320_v51 = vsub.f32 1.0, %v314_v49  ;;  %v343_v55 = vmul.f32 %v316_v50, %v314_v49 }
  0x3c   : > { %v315_v52 = vsel %vm306_vm3, %v292_v46, 0.0  ;;  %v317_v53 = vsel %vm306_vm3, %v294_v47, 0.0 }
  0x3d   : > { %vm319_vm5 = vcmp.eq.f32.partialorder %v317_v53, 1.0  ;;  %v321_v56 = vsub.f32 1.0, %v315_v52  ;;  %v322_v57 = vsel %vm318_vm4, %v314_v49, %v320_v51  ;;  %v341_v58 = vadd.f32 %v315_v52, %v314_v49 }
  0x3e   : > { %v324_v59 = vadd.f32 1e-06, %v322_v57  ;;  %v342_v61 = vadd.f32 %v317_v53, %v316_v50  ;;  %v344_v62 = vmul.f32 %v317_v53, %v315_v52  ;;  %v332_v5 = vsub.f32 1.0, %v322_v57 }
  0x3f   : > { %v323_v63 = vsel %vm319_vm5, %v315_v52, %v321_v56  ;;  %v351_v0 = vadd.f32 %v341_v58, %v288_v54 }
  0x40   : > { %v325_v1 = vadd.f32 1e-06, %v323_v63  ;;  %479 = vlog2.f32 %v324_v59  ;;  %v352_v3 = vadd.f32 %v342_v61, %v289_v60  ;;  %v345_v4 = vadd.f32 %v344_v62, %v343_v55 }
  0x41   : > { %355 = vst [vmem:[%s552_s19 + $0x8] sm:$0xff] %v351_v0  ;;  %v333_v7 = vsub.f32 1.0, %v323_v63  ;;  %v334_v8 = vmul.f32 %v332_v5, %v332_v5 }
  0x42   : > { %481 = vlog2.f32 %v325_v1  ;;  %356 = vst [vmem:[%s552_s19 + $0x10] sm:$0xff] %v352_v3  ;;  %v353_v6 = vadd.f32 %v345_v4, %v290_v2 }
  0x43   : > { %v335_v9 = vmul.f32 %v333_v7, %v333_v7  ;;  %v336_v12 = vmul.f32 %v334_v8, %v332_v5 }
  0x44   : > { %357 = vst [vmem:[%s552_s19 + $0x18] sm:$0xff] %v353_v6 }
  0x45   : > { %v337_v16 = vmul.f32 %v335_v9, %v333_v7 }
  0x4a   : > { %v480_v10 = vpop.eup %479 }
  0x4b   : > { %v327_v11 = vmul.f32 0.6931472, %v480_v10 }
  0x4c   : > { %v482_v13 = vpop.eup %481 }
  0x4d   : > { %v329_v14 = vmul.f32 0.6931472, %v482_v13  ;;  %v330_v15 = vsub.f32 0.0, %v327_v11 }
  0x4f   : > { %v331_v17 = vsub.f32 0.0, %v329_v14  ;;  %v338_v18 = vmul.f32 %v336_v12, %v330_v15 }
  0x51   : > { %v339_v19 = vmul.f32 %v337_v16, %v331_v17 }
  0x53   : > { %v340_v21 = vadd.f32 %v339_v19, %v338_v18 }
  0x55   : > { %v350_v22 = vadd.f32 %v340_v21, %v287_v20 }
  0x57   : > { %354 = vst [vmem:[%s552_s19] sm:$0xff] %v350_v22 }
  0x58 PF: > { %s12_s11 = sadd.s32 1, %s505_s11   ;;  %s608_s9 = smov %s501_s10 }
  0x59   : > { %p9_p8 = scmp.ge.s32.totalorder %s12_s11, 4   ;;  %s609_s10 = smov %s611_s12 }
  0x5b   :  { %11 = sbr.rel (!%p9_p8) target bundleno = 2 (0x2), region = 73 }

</bundles_post_ra>
